<compile_context>
chip_gen: v5e
topology: v5e:2x2
jax: 0.10.0
libtpu: 0.0.40
codegen_flags: <defaults>
</compile_context>

<pallas_src>
import functools

import jax
import jax.numpy as jnp
from jax.experimental import pallas as pl
from jax.experimental.pallas import tpu as pltpu

_LANE = 128


def _round_up(x, m):
    return ((x + m - 1) // m) * m


def _drop_path_kernel(mask_ref, x_ref, o_ref, *, inv_keep_prob):
    # mask_ref: (B,) int32 in SMEM (scalar prefetch), 1 = keep, 0 = drop.
    # x_ref/o_ref: (tm, 128) feature tile of sample b = program_id(0).
    b = pl.program_id(0)
    scale = jnp.where(mask_ref[b] != 0,
                      jnp.float32(inv_keep_prob), jnp.float32(0.0))
    o_ref[...] = (x_ref[...].astype(jnp.float32) * scale).astype(o_ref.dtype)


def drop_path(hidden_state, rand, drop_prob, training=True, *, force_pallas=False):
    """DropPath forward.

    hidden_state: (B, ...) array.
    rand:         (B,)-shaped uniform [0,1) draws (same role as torch.rand).
    """
    # TODO(synk): torch.rand's RNG stream itself is not reproduced; the uniform
    # draws are taken as an explicit input instead.
    if drop_prob == 0.0 or not training:
        return hidden_state

    keep_prob = 1.0 - float(drop_prob)
    orig_shape = hidden_state.shape
    B = orig_shape[0]
    N = 1
    for d in orig_shape[1:]:
        N *= int(d)

    # Per-sample keep/drop decision, computed once in f32 so bf16/fp16 inputs
    # can't flip the decision near the boundary.
    rand_f32 = jnp.asarray(rand).reshape(B).astype(jnp.float32)
    mask_f32 = jnp.floor(keep_prob + rand_f32)          # 0.0 or 1.0
    mask_i32 = mask_f32.astype(jnp.int32)

    itemsize = jnp.dtype(hidden_state.dtype).itemsize
    total_bytes = B * N * itemsize

    # Tiny activations: pallas_call launch/DMA setup costs more than the work.
    if total_bytes < (256 * 1024) and not force_pallas:
        scale = (mask_f32 * (1.0 / keep_prob)).reshape(
            (B,) + (1,) * (len(orig_shape) - 1))
        return (hidden_state.astype(jnp.float32) * scale).astype(hidden_state.dtype)

    # Sublane packing: 8 rows for 32-bit, 16 for bf16/fp16, 32 for 8-bit.
    sub = max(8, 32 // itemsize)
    # ~2 MiB blocks: ~85% of HBM roofline on v6e-class elementwise kernels,
    # 4 double-buffers stay under every generation's default scoped VMEM.
    target_block_bytes = 2 * 1024 * 1024
    tm = max(sub, (target_block_bytes // (_LANE * itemsize)) // sub * sub)

    R = -(-N // _LANE)                    # rows of 128 lanes per sample
    tm = min(tm, _round_up(R, sub))       # don't tile past the actual data
    R_pad = _round_up(R, tm)
    N_pad = R_pad * _LANE

    xf = hidden_state.reshape(B, N)
    if N_pad != N:
        xf = jnp.pad(xf, ((0, 0), (0, N_pad - N)))
    x3 = xf.reshape(B, R_pad, _LANE)

    grid = (B, R_pad // tm)
    kernel = functools.partial(_drop_path_kernel, inv_keep_prob=1.0 / keep_prob)

    out3 = pl.pallas_call(
        kernel,
        out_shape=jax.ShapeDtypeStruct((B, R_pad, _LANE), hidden_state.dtype),
        grid_spec=pltpu.PrefetchScalarGridSpec(
            num_scalar_prefetch=1,
            grid=grid,
            in_specs=[
                pl.BlockSpec((None, tm, _LANE), lambda b, j, mask: (b, j, 0)),
            ],
            out_specs=pl.BlockSpec((None, tm, _LANE), lambda b, j, mask: (b, j, 0)),
        ),
        compiler_params=pltpu.CompilerParams(
            dimension_semantics=("parallel", "parallel")),
    )(mask_i32, x3)

    out = out3.reshape(B, N_pad)
    if N_pad != N:
        out = out[:, :N]
    return out.reshape(orig_shape)


def _reference(x, rand, keep_prob):
    B = x.shape[0]
    mask = jnp.floor(keep_prob + rand.astype(jnp.float32))
    mask = mask.reshape((B,) + (1,) * (x.ndim - 1))
    return ((x.astype(jnp.float32) / keep_prob) * mask).astype(x.dtype)


if __name__ == "__main__":
    key = jax.random.PRNGKey(0)
    kx, kr, kx2, kr2, kx3 = jax.random.split(key, 5)

    drop_prob = 0.3
    keep_prob = 1.0 - drop_prob

    # 1) Small (batch, seq, hidden) shape, forced through the Pallas kernel;
    #    exercises the pad-to-tile path (N=256 -> padded).
    B, S, H = 2, 8, 32
    x = jax.random.normal(kx, (B, S, H), dtype=jnp.float32)
    rand = jax.random.uniform(kr, (B,), dtype=jnp.float32)
    out = jax.block_until_ready(drop_path(x, rand, drop_prob, force_pallas=True))
    ref = _reference(x, rand, keep_prob)
    assert out.shape == x.shape and out.dtype == x.dtype
    assert jnp.allclose(out, ref, atol=1e-5, rtol=1e-5)

    # 2) Medium f32 shape that naturally takes the Pallas path (lane-aligned).
    B2, S2, H2 = 4, 96, 384
    x2 = jax.random.normal(kx2, (B2, S2, H2), dtype=jnp.float32)
    rand2 = jax.random.uniform(kr2, (B2,), dtype=jnp.float32)
    out2 = jax.block_until_ready(drop_path(x2, rand2, drop_prob))
    ref2 = _reference(x2, rand2, keep_prob)
    assert jnp.allclose(out2, ref2, atol=1e-5, rtol=1e-5)

    # 3) bf16 path (sublane packing = 16).
    x3 = jax.random.normal(kx3, (B2, S2, H2), dtype=jnp.bfloat16)
    out3 = jax.block_until_ready(drop_path(x3, rand2, drop_prob))
    ref3 = _reference(x3, rand2, keep_prob)
    assert out3.dtype == jnp.bfloat16
    assert jnp.allclose(out3.astype(jnp.float32), ref3.astype(jnp.float32),
                        atol=1e-2, rtol=2e-2)

    # 4) Non-128-multiple feature count (padding correctness), forced Pallas.
    x4 = jax.random.normal(kx, (2, 8, 33), dtype=jnp.float32)
    out4 = jax.block_until_ready(drop_path(x4, rand, drop_prob, force_pallas=True))
    ref4 = _reference(x4, rand, keep_prob)
    assert jnp.allclose(out4, ref4, atol=1e-5, rtol=1e-5)

    # 5) Identity paths and tiny-input pure-JAX fallback.
    assert jnp.array_equal(drop_path(x, rand, drop_prob, training=False), x)
    assert jnp.array_equal(drop_path(x, rand, 0.0, training=True), x)
    out5 = jax.block_until_ready(drop_path(x, rand, drop_prob))   # fallback path
    assert jnp.allclose(out5, ref, atol=1e-5, rtol=1e-5)

    print("KERNEL_OK")
</pallas_src>

<mosaic_0001>
module attributes {stable_mosaic.version = 11 : i64} {
  func.func @_drop_path_kernel(%arg0: i32, %arg1: i32, %arg2: memref<2xi32, #tpu.memory_space<smem>>, %arg3: memref<1x8x128xf32, #tpu.memory_space<vmem>>, %arg4: memref<1x8x128xf32, #tpu.memory_space<vmem>>) attributes {dimension_semantics = [#tpu.dimension_semantics<parallel>, #tpu.dimension_semantics<parallel>], iteration_bounds = array<i64: 2, 1>, scalar_prefetch = 1 : i64, scratch_operands = 0 : i64, tpu.core_type = #tpu.core_type<tc>, window_params = [{transform_indices = @transform_0, window_bounds = array<i64: 1, 8, 128>}, {transform_indices = @transform_1, window_bounds = array<i64: 1, 8, 128>}]} {
    %0 = arith.index_cast %arg0 : i32 to index
    %1 = memref.load %arg2[%0] : memref<2xi32, #tpu.memory_space<smem>>
    %c0_i32 = arith.constant 0 : i32
    %2 = arith.cmpi ne, %1, %c0_i32 : i32
    %cst = arith.constant 1.42857146 : f32
    %cst_0 = arith.constant 0.000000e+00 : f32
    %3 = arith.select %2, %cst, %cst_0 : f32
    %c0 = arith.constant 0 : index
    %c0_1 = arith.constant 0 : index
    %c0_2 = arith.constant 0 : index
    %4 = vector.load %arg3[%c0, %c0_1, %c0_2] : memref<1x8x128xf32, #tpu.memory_space<vmem>>, vector<1x8x128xf32>
    %5 = vector.shape_cast %4 : vector<1x8x128xf32> to vector<8x128xf32>
    %6 = vector.broadcast %3 : f32 to vector<8x128xf32>
    %7 = arith.mulf %5, %6 : vector<8x128xf32>
    %c0_3 = arith.constant 0 : index
    %c0_4 = arith.constant 0 : index
    %c0_5 = arith.constant 0 : index
    %8 = vector.load %arg4[%c0_3, %c0_4, %c0_5] : memref<1x8x128xf32, #tpu.memory_space<vmem>>, vector<1x8x128xf32>
    %9 = vector.shape_cast %8 : vector<1x8x128xf32> to vector<8x128xf32>
    %10 = vector.shape_cast %7 : vector<8x128xf32> to vector<1x8x128xf32>
    tpu.vector_store %arg4[%c0_3, %c0_4, %c0_5], %10 {strides = array<i32>} : memref<1x8x128xf32, #tpu.memory_space<vmem>>, vector<1x8x128xf32>,
    return
  }
  func.func @transform_0(%arg0: i32, %arg1: i32, %arg2: memref<2xi32, #tpu.memory_space<smem>>) -> (i32, i32, i32) {
    %c0_i32 = arith.constant 0 : i32
    %c0_i32_0 = arith.constant 0 : i32
    return %arg0, %arg1, %c0_i32 : i32, i32, i32
  }
  func.func @transform_1(%arg0: i32, %arg1: i32, %arg2: memref<2xi32, #tpu.memory_space<smem>>) -> (i32, i32, i32) {
    %c0_i32 = arith.constant 0 : i32
    %c0_i32_0 = arith.constant 0 : i32
    return %arg0, %arg1, %c0_i32 : i32, i32, i32
  }
}

</mosaic_0001>

<bundles_post_ra>
// kernel: tpu_custom_call.1
= control target key start
LH: loop header
LB: loop body
LE: loop exit
PB: predicated region body
PF: predicated region fallthrough
CT: control target
= control target key end

     0   :  { %s468_s12 = smov [#allocation3]   ;;  %s608_s0 = inlined_call_operand.hbm [shape: s32[2], index: 0, kind: input, shape index: {}]   ;;  %s609_s1 = inlined_call_operand.hbm [shape: f32[2,8,128], index: 1, kind: input, shape index: {}]   ;;  %s610_s2 = inlined_call_operand.hbm [shape: f32[2,8,128], index: 2, kind: output, shape index: {}]  }
   0x1   :  { %s8_s11 = sshll.u32 %s608_s0, 4  ;;  %s9_s11 = int_to_ptr.hbm [resolvable:$true] %s8_s11 }
   0x2   :  { %11 = dma.hbm_to_smem %s9_s11, 16, %s468_s12, [#allocation2] }
   0x3   :  { %434 = dma.done.wait [#allocation2], 16 }
   0x4   :  { %435 = vsyncadd [#allocation2], 4294967280 }
   0x5   :  { %14 = sfence }
   0x6   :  { %15 = vsyncpa [#allocation5], 0 }
   0x7   :  { %17 = vsyncpa [#allocation5 + $0x1], 0 }
   0x8   :  { %18 = vsyncpa [#allocation6], 0 }
   0x9   :  { %20 = vsyncpa [#allocation6 + $0x1], 0  ;;  %s487_s13 = smov 0   ;;  %s489_s14 = smov 0  }
   0xa   :  { %s491_s15 = smov 0   ;;  %s493_s16 = smov 0  }
   0xb   :  { %s495_s17 = smov 0   ;;  %s497_s0 = smov 0  }
   0xc LB: > { %s264_s18 = sadd.s32 4294967295, %s466_s0   ;;  %s265_s19 = sadd.s32 4294967294, %s466_s0   ;;  %s466_s0 = sphi %s497_s0, %s26_s0   ;;  %s462_s17 = sphi %s495_s17, %s619_s17   ;;  %s458_s16 = sphi %s493_s16, %s618_s16   ;;  %s454_s15 = sphi %s491_s15, %s617_s15   ;;  %s450_s14 = sphi %s489_s14, %s616_s14   ;;  %s446_s13 = sphi %s487_s13, %s615_s13  }
   0xd   : > { %s38_s20 = sadd.s32 1, %s462_s17  ;;  %s47_s21 = sadd.s32 1, %s454_s15 }
   0xe   : > { %p40_p0 = scmp.ge.s32.totalorder %s38_s20, 2  ;;  %p54_p1 = scmp.ne.s32.totalorder %s454_s15, %s450_s14 }
   0xf   : > { %p55_p2 = scmp.eq.s32.totalorder %s466_s0, 0  ;;  %p60_p3 = scmp.ne.s32.totalorder %s450_s14, %s446_s13 }
  0x10   : > { %s621_s20 = smov (%p40_p0, %s38_s20), 0  ;;  %p61_p5 = scmp.eq.s32.totalorder %s264_s18, 0 }
  0x11   : > { %p528_p4 = por %p55_p2, %p54_p1  ;;  %s42_s23 = ssub.s32 %s462_s17, %s621_s20 }
  0x12   : > { %p86_p6 = scmp.eq.s32.totalorder %s264_s18, 1  ;;  %p45_p7 = scmp.eq.s32.totalorder %s42_s23, 0 }
  0x13   : > { %p534_p8 = por %p61_p5, %p60_p3  ;;  %p92_p10 = scmp.eq.s32.totalorder %s265_s19, 1 }
  0x14   : > { %p538_p9 = por %p86_p6, %p54_p1  ;;  %p267_p12 = scmp.ge.s32.totalorder %s466_s0, 2 }
  0x15   : > { %s543_s26 = scalar_select %p45_p7, %s454_s15, %s47_s21  }
  0x16   : > { %p545_p11 = por %p92_p10, %p60_p3  ;;  %p289_p13 = scmp.lt.s32.totalorder %s466_s0, 2 }
  0x17   : > { %s112_s28 = sand.u32 1, %s454_s15   ;;  %s269_s30 = sshll.u32 %s462_s17, 3 }
  0x18   : > { %s268_s29 = sshll.u32 %s112_s28, 3  ;;  %s121_s5 = scalar_lea.hbm %s609_s1, %s269_s30 }
  0x19   : > { %s116_s6 = scalar_lea.vmem [#allocation4], %s268_s29  ;;  %s123_s8 = sshll.u32 %s121_s5, 4  ;;  %s124_s8 = int_to_ptr.hbm [resolvable:$true] %s123_s8 }
  0x1a   : > { %s125_s7 = sshll.u32 %s116_s6, 4  ;;  %p282_p0 = pnand %p289_p13, %p528_p4  ;;  %s126_s7 = int_to_ptr.vmem [resolvable:$true] %s125_s7 }
  0x1b   : > { %p270_p1 = scmp.ge.s32.totalorder %s466_s0, 1  ;;  %p130_p2 = scmp.lt.s32.totalorder %s466_s0, 3 }
  0x1c   : > { %s113_s9 = scalar_lea.sflag [#allocation5], %s112_s28 }
  0x1d   : > { %284 = dma.hbm_to_vmem [thread:$0]  (!%p282_p0), %s124_s8, 128, %s126_s7, %s113_s9  }
  0x1e   : > { %p131_p3 = pnand %p270_p1, %p130_p2 }
  0x1f   : > { %s561_s10 = sand.u32 (!%p131_p3), 1, %s450_s14  }
  0x20   : > { %134 = sbr.rel (%p131_p3) target bundleno = 54 (0x36), region = 24  ;;  %s271_s11 = sshll.u32 (!%p131_p3), %s561_s10, 3 }
  0x21   : > { %s137_s12 = scalar_lea.sflag (!%p131_p3), [#allocation5], %s561_s10  ;;  %s140_s18 = scalar_lea.vmem (!%p131_p3), [#allocation4], %s271_s11 }
  0x25   : > { %437 = dma.done.wait (%p534_p8), %s137_s12, 128  }
  0x26   : > { %439 = vsyncadd (%p534_p8), %s137_s12, 4294967168  ;;  %s160_s19 = sld [smem:[#allocation3 + %s458_s16]]  ;;  %s274_s21 = sshll.u32 %s458_s16, 3  ;;  %v163_v0 = vld [vmem:[%s140_s18] sm:$0xff] }
  0x27   : > { %s179_s28 = scalar_lea.hbm %s610_s2, %s274_s21  ;;  %s159_s29 = scalar_lea.vmem [#allocation7], %s271_s11 }
  0x28   : > { %s181_s30 = sshll.u32 %s159_s29, 4  ;;  %s183_s3 = sshll.u32 %s179_s28, 4  ;;  %s182_s30 = int_to_ptr.vmem [resolvable:$true] %s181_s30  ;;  %s184_s3 = int_to_ptr.hbm [resolvable:$true] %s183_s3 }
  0x29   : > { %s168_s24 = scalar_lea.sflag [#allocation6], %s561_s10  ;;  %s396_s5 = sshra.s32 %s184_s3, 4  ;;  %s397_s5 = int_to_ptr.hbm [resolvable:$true] %s396_s5 }
  0x2a   : > { %s398_s16 = scalar_lea.hbm %s397_s5, 8  ;;  %s402_s8 = scalar_lea.hbm %s610_s2, 16 }
  0x2b   : > { %p399_p5 = scmp.ne.s32.totalorder %s397_s5, %s398_s16  ;;  %p403_p8 = scmp.lt.s32.totalorder %s397_s5, %s610_s2 }
  0x2c   : > { %p161_p4 = scmp.ne.s32.totalorder %s160_s19, 0  ;;  %p404_p10 = scmp.lt.s32.totalorder %s402_s8, %s398_s16 }
  0x2d   : > { %p400_p6 = pnand %p399_p5, %p538_p9 }
  0x2e   : > { %s162_s4 = scalar_select %p161_p4, 1.4285715, 0.0 }
  0x2f   : > { %p401_p7 = pneg %p400_p6  ;;  %p405_p13 = por %p404_p10, %p403_p8 }
  0x30   : > { %v164_v1 = vstv %s162_s4 }
  0x31   : > { %v165_v2 = vmul.f32 %v164_v1, %v163_v0  ;;  %p406_p0 = pnand %p405_p13, %p401_p7 }
  0x33   : > { %166 = vst [vmem:[%s159_s29] sm:$0xff] %v165_v2 }
  0x34   : > { %409 = shalt.err (!%p406_p0)
}
  0x35   : > { %279 = dma.vmem_to_hbm [thread:$0]  (%p538_p9), %s182_s30, 128, %s184_s3, %s168_s24  }
  0x36 PF: > { %s195_s10 = sand.u32 1, %s446_s13   ;;  %p286_p1 = pnand %p267_p12, %p545_p11 }
  0x37   : > { %s196_s12 = scalar_lea.sflag [#allocation6], %s195_s10 }
  0x38   : > { %p287_p2 = pneg %p286_p1 }
  0x3a   : > { %441 = dma.done.wait (%p287_p2), %s196_s12, 128  }
  0x3b   : > { %443 = vsyncadd (%p287_p2), %s196_s12, 4294967168  ;;  %s26_s0 = sadd.s32 1, %s466_s0   ;;  %s615_s13 = smov %s450_s14 }
  0x3c   : > { %p23_p3 = scmp.ge.s32.totalorder %s26_s0, 4   ;;  %s616_s14 = smov %s454_s15 }
  0x3d   : > { %s617_s15 = smov %s543_s26  ;;  %s618_s16 = smov %s462_s17 }
  0x3e   : > { %s619_s17 = smov %s621_s20  ;;  %25 = sbr.rel (!%p23_p3) target bundleno = 12 (0xc), region = 69 }
  0x43   :  { %202 = vsyncpa [#allocation5], 1 }
  0x44   :  { %204 = vsyncpa [#allocation5 + $0x1], 1 }
  0x45   :  { %205 = vsyncpa [#allocation6], 1 }
  0x46   :  { %207 = vsyncpa [#allocation6 + $0x1], 1 }

</bundles_post_ra>
